<compile_context>
chip_gen: v7x
topology: tpu7x:2x2x1
jax: 0.10.0
libtpu: 0.0.40
codegen_flags: <defaults>
</compile_context>

<pallas_src>
import jax
import jax.numpy as jnp
from jax.experimental import pallas as pl
from jax.experimental.pallas import tpu as pltpu

# ---------------------------------------------------------------------------
# Generation-aware VMEM sizing
# ---------------------------------------------------------------------------
_VMEM_CACHE = None


def _vmem_params():
    """Returns (vmem_limit_bytes, per-block byte budget)."""
    global _VMEM_CACHE
    if _VMEM_CACHE is None:
        cap = 64 * 1024 * 1024  # conservative default = v7x physical per-TC VMEM
        try:
            info = pltpu.get_tpu_info()
            cap = int(getattr(info, "vmem_capacity_bytes", cap))
        except Exception:
            pass
        limit = min(cap // 2, 64 * 1024 * 1024)          # v5e/v6e: 64 MiB, v7x: 32 MiB
        budget = max(1 << 20, min(16 << 20, limit // 4))  # v5e/v6e: 16 MiB, v7x: 8 MiB
        _VMEM_CACHE = (limit, budget)
    return _VMEM_CACHE


def _sublane_multiple(dtype):
    """Packed-sublane multiple: 8 for f32, 16 for bf16, 32 for int8/fp8."""
    return max(8, 32 // jnp.dtype(dtype).itemsize)


def _largest_divisor_tile(n, maximum, multiple):
    """Largest t <= min(n, maximum) with t % multiple == 0 and n % t == 0, else None."""
    maximum = min(n, maximum)
    t = (maximum // multiple) * multiple
    while t >= multiple:
        if n % t == 0:
            return t
        t -= multiple
    return None


def _largest_divisor(n, maximum):
    for d in range(max(1, min(n, maximum)), 0, -1):
        if n % d == 0:
            return d
    return 1


# ---------------------------------------------------------------------------
# Adaptive-bin weight matrices (PyTorch AdaptiveAvgPool1d bin semantics)
# ---------------------------------------------------------------------------
def _bin_weight_rows(length, out_channel):
    rows = []
    for i in range(out_channel):
        s = (i * length) // out_channel
        e = -(-((i + 1) * length) // out_channel)  # integer ceil((i+1)*L/oc)
        w = 1.0 / float(e - s)
        rows.append([0.0] * s + [w] * (e - s) + [0.0] * (length - e))
    return rows


def _weights_oc_by_len(length, out_channel):
    """(out_channel, length) f32 averaging matrix."""
    return jnp.asarray(_bin_weight_rows(length, out_channel), dtype=jnp.float32)


def _weights_len_by_oc(length, out_channel):
    """(length, out_channel) f32 averaging matrix."""
    return _weights_oc_by_len(length, out_channel).T


# ---------------------------------------------------------------------------
# Kernels
# ---------------------------------------------------------------------------
def _make_mean_axis1_kernel(inv_n):
    """out_channel == 1 fast path: mean over axis 1, accumulated across L tiles."""

    def kernel(x_ref, o_ref, acc_ref):
        lt = pl.program_id(2)

        @pl.when(lt == 0)
        def _():
            acc_ref[...] = jnp.zeros_like(acc_ref)

        # (b_tile, l_tile, k_tile): sublane reduction -> plain VPU adds.
        acc_ref[...] += jnp.sum(x_ref[...].astype(jnp.float32), axis=1, keepdims=True)

        @pl.when(lt == pl.num_programs(2) - 1)
        def _():
            o_ref[...] = (acc_ref[...] * inv_n).astype(o_ref.dtype)

    return kernel


def _bins_axis1_kernel(wt_ref, x_ref, o_ref, acc_ref):
    """Adaptive bins over axis 1 (sublanes) via MXU: acc[oc,k] += W[oc,l] @ x[l,k]."""
    lt = pl.program_id(2)

    @pl.when(lt == 0)
    def _():
        acc_ref[...] = jnp.zeros_like(acc_ref)

    acc_ref[...] += jnp.dot(
        wt_ref[...], x_ref[0].astype(jnp.float32),
        preferred_element_type=jnp.float32)

    @pl.when(lt == pl.num_programs(2) - 1)
    def _():
        o_ref[0] = acc_ref[...].astype(o_ref.dtype)


def _bins_lane_kernel(w_ref, x_ref, o_ref, acc_ref):
    """Adaptive bins over the last (lane) axis via MXU: acc[s,oc] += x[s,c] @ W[c,oc]."""
    ct = pl.program_id(2)

    @pl.when(ct == 0)
    def _():
        acc_ref[...] = jnp.zeros_like(acc_ref)

    acc_ref[...] += jnp.dot(
        x_ref[0].astype(jnp.float32), w_ref[...],
        preferred_element_type=jnp.float32)

    @pl.when(ct == pl.num_programs(2) - 1)
    def _():
        # Output last dim is out_channel (small); narrow store is negligible vs
        # the input read, and it lands directly in the PyTorch layout with no
        # wrapper transpose.
        o_ref[0] = acc_ref[...].astype(o_ref.dtype)


# ---------------------------------------------------------------------------
# Tile choosers
# ---------------------------------------------------------------------------
def _choose_mean_tiles(B, L, K, itemsize, budget, sub):
    # Lane tile: prefer full K (contiguous DMA rows in HBM) when it fits.
    if K % 128 == 0 and K * itemsize * sub > budget:
        k_tile = _largest_divisor_tile(K, max(128, budget // (sub * itemsize)), 128) or 128
    else:
        k_tile = K
    # v7x: keep >= 2 parallel blocks when B == 1 and there is real work.
    if B == 1 and k_tile == K and K % 256 == 0 and L * K * itemsize > (1 << 20):
        k_tile = K // 2
    # Sublane (reduction) tile, rounded to the packed multiple of the dtype.
    l_mult = sub if L % sub == 0 else (8 if L % 8 == 0 else None)
    if l_mult is None:
        l_tile = L
    else:
        l_tile = _largest_divisor_tile(
            L, max(l_mult, budget // (k_tile * itemsize)), l_mult) or L
    # Fold batch into the block when per-step bytes are small.
    b_tile = 1
    block_bytes = l_tile * k_tile * itemsize
    if B > 1 and l_tile == L and k_tile == K and 2 * block_bytes <= budget:
        b_tile = _largest_divisor(B, max(1, budget // block_bytes))
        if b_tile == B:
            # Leave >= 2 parallel blocks for v7x's second TensorCore.
            b_tile = _largest_divisor(B, max(1, B // 2))
    return b_tile, l_tile, k_tile


def _choose_bins_axis1_tiles(B, L, K, itemsize, budget):
    l_can_tile = (L % 128 == 0)          # l_tile is also W's lane dim
    min_l = 128 if l_can_tile else L
    if K % 128 == 0 and K * min_l * itemsize > budget:
        k_tile = _largest_divisor_tile(K, max(128, budget // (min_l * itemsize)), 128) or 128
    else:
        k_tile = K
    if B == 1 and k_tile == K and K % 256 == 0 and L * K * itemsize > (1 << 20):
        k_tile = K // 2                   # v7x: both TensorCores
    if l_can_tile:
        l_tile = _largest_divisor_tile(L, max(128, budget // (k_tile * itemsize)), 128) or 128
    else:
        l_tile = L
    return l_tile, k_tile


def _choose_lane_pool_tiles(B, S, C, itemsize, budget, sub):
    c_can_tile = (C % 128 == 0)          # c_tile is x's lane dim and W's sublane dim
    s_mult = sub if S % sub == 0 else (8 if S % 8 == 0 else None)
    min_s = s_mult if s_mult is not None else S
    if c_can_tile and C * min_s * itemsize > budget:
        c_tile = _largest_divisor_tile(C, max(128, budget // (min_s * itemsize)), 128) or 128
    else:
        c_tile = C
    if s_mult is None:
        s_tile = S
    else:
        s_tile = _largest_divisor_tile(
            S, max(s_mult, budget // (c_tile * itemsize)), s_mult) or S
    # v7x: if B == 1 and only one S block, split S so both cores get work.
    if (B == 1 and s_mult is not None and s_tile == S
            and S % (2 * s_mult) == 0 and S * C * itemsize > (1 << 20)):
        s_tile = S // 2
    return s_tile, c_tile


# ---------------------------------------------------------------------------
# pallas_call wrappers
# ---------------------------------------------------------------------------
def _pool_axis1_mean(x):
    """(B, L, K) -> (B, 1, K): mean over axis 1 (sublane reduction, f32 acc)."""
    B, L, K = x.shape
    itemsize = jnp.dtype(x.dtype).itemsize
    limit, budget = _vmem_params()
    sub = _sublane_multiple(x.dtype)
    b_tile, l_tile, k_tile = _choose_mean_tiles(B, L, K, itemsize, budget, sub)
    grid = (B // b_tile, K // k_tile, L // l_tile)
    return pl.pallas_call(
        _make_mean_axis1_kernel(1.0 / L),
        out_shape=jax.ShapeDtypeStruct((B, 1, K), x.dtype),
        grid=grid,
        in_specs=[pl.BlockSpec((b_tile, l_tile, k_tile), lambda b, kt, lt: (b, lt, kt))],
        out_specs=pl.BlockSpec((b_tile, 1, k_tile), lambda b, kt, lt: (b, 0, kt)),
        scratch_shapes=[pltpu.VMEM((b_tile, 1, k_tile), jnp.float32)],
        compiler_params=pltpu.CompilerParams(
            dimension_semantics=("parallel", "parallel", "arbitrary"),
            vmem_limit_bytes=limit,
        ),
    )(x)


def _pool_axis1_bins(x, out_channel):
    """(B, L, K) -> (B, out_channel, K): adaptive bins over axis 1 via MXU matmul."""
    B, L, K = x.shape
    itemsize = jnp.dtype(x.dtype).itemsize
    limit, budget = _vmem_params()
    l_tile, k_tile = _choose_bins_axis1_tiles(B, L, K, itemsize, budget)
    wt = _weights_oc_by_len(L, out_channel)  # (out_channel, L) f32
    grid = (B, K // k_tile, L // l_tile)
    return pl.pallas_call(
        _bins_axis1_kernel,
        out_shape=jax.ShapeDtypeStruct((B, out_channel, K), x.dtype),
        grid=grid,
        in_specs=[
            pl.BlockSpec((out_channel, l_tile), lambda b, kt, lt: (0, lt)),
            pl.BlockSpec((1, l_tile, k_tile), lambda b, kt, lt: (b, lt, kt)),
        ],
        out_specs=pl.BlockSpec((1, out_channel, k_tile), lambda b, kt, lt: (b, 0, kt)),
        scratch_shapes=[pltpu.VMEM((out_channel, k_tile), jnp.float32)],
        compiler_params=pltpu.CompilerParams(
            dimension_semantics=("parallel", "parallel", "arbitrary"),
            vmem_limit_bytes=limit,
        ),
    )(wt, x)


def _pool_lane_bins(x, out_channel):
    """(B, S, C) -> (B, S, out_channel): adaptive bins over the last axis via MXU.

    No wrapper-side HBM transpose: the kernel reads x in its native layout and
    writes the PyTorch-ordered output directly.
    """
    B, S, C = x.shape
    itemsize = jnp.dtype(x.dtype).itemsize
    limit, budget = _vmem_params()
    sub = _sublane_multiple(x.dtype)
    s_tile, c_tile = _choose_lane_pool_tiles(B, S, C, itemsize, budget, sub)
    w = _weights_len_by_oc(C, out_channel)  # (C, out_channel) f32
    grid = (B, S // s_tile, C // c_tile)
    return pl.pallas_call(
        _bins_lane_kernel,
        out_shape=jax.ShapeDtypeStruct((B, S, out_channel), x.dtype),
        grid=grid,
        in_specs=[
            pl.BlockSpec((c_tile, out_channel), lambda b, st, ct: (ct, 0)),
            pl.BlockSpec((1, s_tile, c_tile), lambda b, st, ct: (b, st, ct)),
        ],
        out_specs=pl.BlockSpec((1, s_tile, out_channel), lambda b, st, ct: (b, st, 0)),
        scratch_shapes=[pltpu.VMEM((s_tile, out_channel), jnp.float32)],
        compiler_params=pltpu.CompilerParams(
            dimension_semantics=("parallel", "parallel", "arbitrary"),
            vmem_limit_bytes=limit,
        ),
    )(w, x)


# ---------------------------------------------------------------------------
# Module-equivalent wrapper (mirrors torch adaptive_pooler.forward exactly).
# ---------------------------------------------------------------------------
class AdaptivePoolerPallas:
    def __init__(self, out_channel=1, output_shape=None, dense=False):
        self.out_channel = out_channel
        self.output_shape = output_shape
        self.dense = dense

    def __call__(self, x):
        if x.ndim == 3:
            B, S, C = x.shape
            if self.out_channel == 1 and not self.dense:
                # torch: transpose(1,2) then pool over S -> (B, C, 1) -> (B, C).
                # Equivalent to a mean over axis 1 of the untransposed input.
                flat = _pool_axis1_mean(x).reshape(B, C)
            else:
                # torch: pool over the feature dim C -> (B, S, out_channel).
                # Pool the lane axis in-place; no HBM transpose of the input.
                pooled = _pool_lane_bins(x, self.out_channel)          # (B, S, oc)
                flat = pooled.reshape(B, S * self.out_channel)
            if self.output_shape is not None:
                return flat.reshape(B, *self.output_shape)
            return flat
        else:
            # 4D: pool over channels; fold H*W into the lane axis (free reshape).
            B, C, H, W = x.shape
            xr = x.reshape(B, C, H * W)
            if self.out_channel == 1:
                return _pool_axis1_mean(xr).reshape(B, H, W)
            out = _pool_axis1_bins(xr, self.out_channel)               # (B, oc, H*W)
            return out.reshape(B, self.out_channel, H, W)


if __name__ == "__main__":
    key = jax.random.PRNGKey(0)
    k1, k2 = jax.random.split(key)
    x4 = jax.random.normal(k1, (2, 4, 16, 16), dtype=jnp.float32)
    x3 = jax.random.normal(k2, (2, 8, 32), dtype=jnp.float32)

    # Default config: out_channel=1, output_shape=None, dense=False.
    pooler = AdaptivePoolerPallas(out_channel=1)
    y4 = jax.block_until_ready(pooler(x4))   # (2, 16, 16) — mean over channels
    y3 = jax.block_until_ready(pooler(x3))   # (2, 32)     — mean over sequence
    assert y4.shape == (2, 16, 16) and y3.shape == (2, 32)
    assert jnp.allclose(y4, jnp.mean(x4, axis=1), atol=1e-5), "4D mismatch"
    assert jnp.allclose(y3, jnp.mean(x3, axis=1), atol=1e-5), "3D mismatch"

    # 4D path with general out_channel (adaptive bins over channels, MXU path).
    pooler2 = AdaptivePoolerPallas(out_channel=2)
    y4b = jax.block_until_ready(pooler2(x4))  # (2, 2, 16, 16)
    ref4b = jnp.stack([x4[:, 0:2].mean(axis=1), x4[:, 2:4].mean(axis=1)], axis=1)
    assert y4b.shape == (2, 2, 16, 16)
    assert jnp.allclose(y4b, ref4b, atol=1e-5), "4D out_channel=2 mismatch"

    # 3D dense path (pool over the feature axis, no wrapper transpose).
    pooler3 = AdaptivePoolerPallas(out_channel=2, dense=True)
    y3b = jax.block_until_ready(pooler3(x3))  # (2, 16)
    ref3b = jnp.stack(
        [x3[:, :, 0:16].mean(axis=2), x3[:, :, 16:32].mean(axis=2)], axis=2
    ).reshape(2, -1)
    assert y3b.shape == (2, 16)
    assert jnp.allclose(y3b, ref3b, atol=1e-5), "3D dense out_channel=2 mismatch"

    # 3D dense path with out_channel=1 (lane-axis mean).
    pooler4 = AdaptivePoolerPallas(out_channel=1, dense=True)
    y3c = jax.block_until_ready(pooler4(x3))  # (2, 8)
    assert y3c.shape == (2, 8)
    assert jnp.allclose(y3c, x3.mean(axis=2), atol=1e-5), "3D dense out_channel=1 mismatch"

    print("KERNEL_OK")
</pallas_src>

<mosaic_0001>
module attributes {stable_mosaic.version = 11 : i64} {
  func.func @kernel(%arg0: i32, %arg1: i32, %arg2: i32, %arg3: memref<1x4x256xf32, #tpu.memory_space<vmem>>, %arg4: memref<1x1x256xf32, #tpu.memory_space<vmem>>, %arg5: memref<1x1x256xf32, #tpu.memory_space<vmem>>) attributes {dimension_semantics = [#tpu.dimension_semantics<parallel>, #tpu.dimension_semantics<parallel>, #tpu.dimension_semantics<arbitrary>], iteration_bounds = array<i64: 2, 1, 1>, scalar_prefetch = 0 : i64, scratch_operands = 1 : i64, tpu.core_type = #tpu.core_type<tc>, window_params = [{transform_indices = @transform_0, window_bounds = array<i64: 1, 4, 256>}, {transform_indices = @transform_1, window_bounds = array<i64: 1, 1, 256>}]} {
    %c0_i32 = arith.constant 0 : i32
    %0 = arith.cmpi eq, %arg2, %c0_i32 : i32
    %1 = arith.extui %0 : i1 to i32
    %c0_i32_0 = arith.constant 0 : i32
    %2 = arith.cmpi ne, %1, %c0_i32_0 : i32
    scf.if %2 {
      %cst_11 = arith.constant 0.000000e+00 : f32
      %12 = vector.broadcast %cst_11 : f32 to vector<1x1x256xf32>
      %c0_12 = arith.constant 0 : index
      %c0_13 = arith.constant 0 : index
      %c0_14 = arith.constant 0 : index
      %13 = vector.load %arg5[%c0_12, %c0_13, %c0_14] : memref<1x1x256xf32, #tpu.memory_space<vmem>>, vector<1x1x256xf32>
      tpu.vector_store %arg5[%c0_12, %c0_13, %c0_14], %12 {strides = array<i32>} : memref<1x1x256xf32, #tpu.memory_space<vmem>>, vector<1x1x256xf32>,
    } else {
    }
    %c0 = arith.constant 0 : index
    %c0_1 = arith.constant 0 : index
    %c0_2 = arith.constant 0 : index
    %3 = vector.load %arg5[%c0, %c0_1, %c0_2] : memref<1x1x256xf32, #tpu.memory_space<vmem>>, vector<1x1x256xf32>
    %c0_3 = arith.constant 0 : index
    %c0_4 = arith.constant 0 : index
    %c0_5 = arith.constant 0 : index
    %4 = vector.load %arg3[%c0_3, %c0_4, %c0_5] : memref<1x4x256xf32, #tpu.memory_space<vmem>>, vector<1x4x256xf32>
    %cst = arith.constant dense<0.000000e+00> : vector<1x256xf32>
    %5 = vector.multi_reduction <add>, %4, %cst [1] : vector<1x4x256xf32> to vector<1x256xf32>
    %6 = vector.shape_cast %5 : vector<1x256xf32> to vector<1x1x256xf32>
    %7 = arith.addf %3, %6 : vector<1x1x256xf32>
    %c0_6 = arith.constant 0 : index
    %c0_7 = arith.constant 0 : index
    %c0_8 = arith.constant 0 : index
    %8 = vector.load %arg5[%c0_6, %c0_7, %c0_8] : memref<1x1x256xf32, #tpu.memory_space<vmem>>, vector<1x1x256xf32>
    tpu.vector_store %arg5[%c0_6, %c0_7, %c0_8], %7 {strides = array<i32>} : memref<1x1x256xf32, #tpu.memory_space<vmem>>, vector<1x1x256xf32>,
    %c0_i32_9 = arith.constant 0 : i32
    %9 = arith.cmpi eq, %arg2, %c0_i32_9 : i32
    %10 = arith.extui %9 : i1 to i32
    %c0_i32_10 = arith.constant 0 : i32
    %11 = arith.cmpi ne, %10, %c0_i32_10 : i32
    scf.if %11 {
      %c0_11 = arith.constant 0 : index
      %c0_12 = arith.constant 0 : index
      %c0_13 = arith.constant 0 : index
      %12 = vector.load %arg5[%c0_11, %c0_12, %c0_13] : memref<1x1x256xf32, #tpu.memory_space<vmem>>, vector<1x1x256xf32>
      %cst_14 = arith.constant 2.500000e-01 : f32
      %13 = vector.broadcast %cst_14 : f32 to vector<1x1x256xf32>
      %14 = arith.mulf %12, %13 : vector<1x1x256xf32>
      %c0_15 = arith.constant 0 : index
      %c0_16 = arith.constant 0 : index
      %c0_17 = arith.constant 0 : index
      %15 = vector.load %arg4[%c0_15, %c0_16, %c0_17] : memref<1x1x256xf32, #tpu.memory_space<vmem>>, vector<1x1x256xf32>
      tpu.vector_store %arg4[%c0_15, %c0_16, %c0_17], %14 {strides = array<i32>} : memref<1x1x256xf32, #tpu.memory_space<vmem>>, vector<1x1x256xf32>,
    } else {
    }
    return
  }
  func.func @transform_0(%arg0: i32, %arg1: i32, %arg2: i32) -> (i32, i32, i32) {
    %c0_i32 = arith.constant 0 : i32
    return %arg0, %arg2, %arg1 : i32, i32, i32
  }
  func.func @transform_1(%arg0: i32, %arg1: i32, %arg2: i32) -> (i32, i32, i32) {
    %c0_i32 = arith.constant 0 : i32
    %c0_i32_0 = arith.constant 0 : i32
    return %arg0, %c0_i32, %arg1 : i32, i32, i32
  }
}

</mosaic_0001>

<bundles_post_ra>
// kernel: tpu_custom_call.1
= control target key start
LH: loop header
LB: loop body
LE: loop exit
PB: predicated region body
PF: predicated region fallthrough
CT: control target
= control target key end

     0   :  { %6 = vsyncpa [#allocation4], 0  ;;  %s722_s0 = inlined_call_operand.hbm [shape: f32[2,4,256], index: 0, kind: input, shape index: {}]   ;;  %s723_s1 = inlined_call_operand.hbm [shape: f32[2,1,256], index: 1, kind: output, shape index: {}]  }
   0x1   :  { %8 = vsyncpa [#allocation4 + $0x1], 0 }
   0x2   :  { %9 = vsyncpa [#allocation5], 0 }
   0x3   :  { %11 = vsyncpa [#allocation5 + $0x1], 0  ;;  %s539_s6 = smov 0   ;;  %s541_s7 = smov 0  }
   0x4   :  { %s543_s8 = smov 0   ;;  %s545_s9 = smov 0  }
   0x5   :  { %s547_s10 = smov 0   ;;  %s549_s11 = smov 0  }
   0x6 LB: > { %s329_s12 = sadd.s32 4294967295, %s523_s11   ;;  %s330_s13 = sadd.s32 4294967294, %s523_s11   ;;  %s523_s11 = sphi %s549_s11, %s17_s11   ;;  %s519_s10 = sphi %s547_s10, %s741_s10   ;;  %s515_s9 = sphi %s545_s9, %s740_s9   ;;  %s511_s8 = sphi %s543_s8, %s739_s8   ;;  %s507_s7 = sphi %s541_s7, %s738_s7   ;;  %s503_s6 = sphi %s539_s6, %s737_s6  }
   0x7   : > { %s36_s14 = sadd.s32 1, %s519_s10  ;;  %s47_s15 = sadd.s32 1, %s511_s8 }
   0x8   : > { %p38_p0 = scmp.ge.s32.totalorder %s36_s14, 2  ;;  %p54_p1 = scmp.ne.s32.totalorder %s511_s8, %s507_s7 }
   0x9   : > { %p55_p2 = scmp.eq.s32.totalorder %s523_s11, 0  ;;  %p60_p3 = scmp.ne.s32.totalorder %s507_s7, %s503_s6 }
   0xa   : > { %s743_s14 = smov (%p38_p0, %s36_s14), 0  ;;  %p61_p5 = scmp.eq.s32.totalorder %s329_s12, 0 }
   0xb   : > { %p580_p4 = por %p55_p2, %p54_p1  ;;  %s40_s17 = ssub.s32 %s519_s10, %s743_s14 }
   0xc   : > { %p86_p6 = scmp.eq.s32.totalorder %s329_s12, 1  ;;  %p45_p7 = scmp.eq.s32.totalorder %s40_s17, 0 }
   0xd   : > { %p586_p8 = por %p61_p5, %p60_p3  ;;  %p92_p10 = scmp.eq.s32.totalorder %s330_s13, 1 }
   0xe   : > { %p590_p9 = por %p86_p6, %p54_p1  ;;  %p358_p13 = scmp.lt.s32.totalorder %s523_s11, 2 }
   0xf   : > { %s595_s20 = scalar_select %p45_p7, %s511_s8, %s47_s15  }
  0x10   : > { %s727_s19 = scalar_select %p590_p9, 1, 0 }
  0x11   : > { %p597_p11 = por %p92_p10, %p60_p3  ;;  %s112_s22 = sand.u32 1, %s511_s8  }
  0x12   : > { %s333_s23 = sshll.u32 %s112_s22, 3  ;;  %s344_s24 = sshll.u32 %s519_s10, 7 }
  0x13   : > { %s728_s21 = scalar_select %p597_p11, 1, 0 }
  0x14   : > { %s608_s27 = scalar_lea.hbm %s722_s0, %s344_s24  ;;  %s116_s28 = scalar_lea.vmem [#allocation3], %s333_s23 }
  0x15   : > { %s128_s29 = sshll.u32 %s116_s28, 4  ;;  %p614_p0 = pnand %p358_p13, %p580_p4  ;;  %s610_s29 = int_to_ptr.vmem [resolvable:$true] %s128_s29 }
  0x16   : > { %s113_s2 = scalar_lea.sflag [#allocation4], %s112_s22  ;;  %s411_s3 = scalar_lea.hbm %s608_s27, 128 }
  0x17   : > { %p412_p3 = scmp.ne.s32.totalorder %s608_s27, %s411_s3  ;;  %p413_p5 = pneg %p614_p0 }
  0x18   : > { %s416_s12 = scalar_lea.hbm %s722_s0, 256  ;;  %p417_p4 = scmp.lt.u32.totalorder %s608_s27, %s722_s0 }
  0x19   : > { %p414_p6 = pnand %p413_p5, %p412_p3  ;;  %p418_p10 = scmp.lt.u32.totalorder %s416_s12, %s411_s3 }
  0x1a   : > { %p420_p12 = scmp.lt.u32.totalorder %s411_s3, %s608_s27 }
  0x1b   : > { %p415_p7 = pneg %p414_p6  ;;  %p419_p13 = por %p418_p10, %p417_p4 }
  0x1d   : > { %p421_p1 = por %p420_p12, %p419_p13 }
  0x1f   : > { %p422_p2 = pnand %p421_p1, %p415_p7 }
  0x21   : > { %425 = shalt.err (!%p422_p2)
}
  0x22   : > { %s426_s16 = scalar_lea.vmem %s610_s29, 128  ;;  %s525_s17 = smov [#allocation3]  }
  0x23   : > { %p427_p3 = scmp.ne.s32.totalorder %s610_s29, %s426_s16  ;;  %s431_s22 = sshll.u32 %s525_s17, 4  ;;  %s432_s22 = int_to_ptr.vmem [resolvable:$false] %s431_s22 }
  0x24   : > { %s433_s23 = scalar_lea.vmem %s432_s22, 256  ;;  %p434_p9 = scmp.lt.s32.totalorder %s610_s29, %s432_s22 }
  0x25   : > { %p429_p6 = pnand %p427_p3, %p413_p5  ;;  %p435_p4 = scmp.lt.s32.totalorder %s433_s23, %s426_s16 }
  0x27   : > { %p430_p11 = pneg %p429_p6  ;;  %p436_p10 = por %p435_p4, %p434_p9 }
  0x29   : > { %p437_p12 = pnand %p436_p10, %p430_p11 }
  0x2b   : > { %440 = shalt.err (!%p437_p12)
}
  0x2c   : > { %353 = dma.hbm_to_vmem [thread:$0]  (!%p614_p0), %s608_s27, 128, %s610_s29, %s113_s2  }
  0x2d   : > { %p730_p1 = scmp.lt.s32.totalorder %s523_s11, 3  ;;  %p731_p2 = scmp.ge.s32.totalorder %s523_s11, 1 }
  0x2f   : > { %p134_p5 = pnand %p731_p2, %p730_p1 }
  0x30   : > { %s650_s24 = sand.u32 (!%p134_p5), 1, %s507_s7  }
  0x31   : > { %137 = sbr.rel (%p134_p5) target bundleno = 105 (0x69), region = 24  ;;  %s337_s25 = sshll.u32 (!%p134_p5), %s650_s24, 3 }
  0x32   : > { %s140_s26 = scalar_lea.sflag (!%p134_p5), [#allocation4], %s650_s24  ;;  %s143_s28 = scalar_lea.vmem (!%p134_p5), [#allocation3], %s337_s25 }
  0x38   : > { %494 = dma.done.wait (%p586_p8), %s140_s26, 128  }
  0x39   : > { %496 = vsyncadd (%p586_p8), %s140_s26, 4294967168  ;;  %v168_v0 = vlaneseq  ;;  %v526_v2 = vmov 0.0   ;;  %vm178_vm1 = vcmask 1043456   ;;  %v174_v3 = vld [vmem:[%s143_s28] sm:$0xff]  ;;  %v527_v12 = vmov 1966171168  }
  0x3a   : > { %v176_v4 = vcombine.high %v174_v3, %v174_v3  ;;  %v179_v5 = vsel %vm178_vm1, %v174_v3, 0.0  ;;  %v197_v13 = vunpack.c.l.s4 %v527_v12  ;;  %s338_s18 = sshll.u32 %s650_s24, 1  ;;  %s345_s30 = sshll.u32 %s515_s9, 5 }
  0x3b   : > { %vm658_vm0 = vcmp.lt.s32.totalorder %v168_v0, 256  ;;  %v180_v6 = vrot.slane %v179_v5, 4  ;;  %v200_v19 = vshrl.u32 %v168_v0, 7  ;;  %s161_s27 = scalar_lea.vmem [#allocation6], %s338_s18  ;;  %s673_s4 = scalar_lea.hbm %s723_s1, %s345_s30 }
  0x3c   : > { %172 = vst.msk [vmem:[#allocation2] sm:$0x3] %vm658_vm0, %v526_v2  ;;  %v186_v7 = vsel %vm178_vm1, %v176_v4, 0.0  ;;  %v198_v18 = vunpack.c.0.s8 %v197_v13  ;;  %s240_s29 = sshll.u32 %s161_s27, 4  ;;  %s224_s5 = scalar_lea.sflag [#allocation5], %s650_s24  ;;  %s668_s29 = int_to_ptr.vmem [resolvable:$true] %s240_s29 }
  0x3d   : > { %v181_v8 = vadd.f32 %v180_v6, %v179_v5  ;;  %v187_v9 = vrot.slane %v186_v7, 4  ;;  %s441_s12 = scalar_lea.vmem %s668_s29, 32  ;;  %p734_p9 = scmp.ne.s32.totalorder %s727_s19, 0 }
  0x3e   : > { %v201_v23 = vsub.s32 %v198_v18, %v200_v19  ;;  %p442_p8 = scmp.ne.s32.totalorder %s668_s29, %s441_s12  ;;  %s528_s9 = smov [#allocation6]  }
  0x3f   : > { %v182_v10 = vrot.slane %v181_v8, 2  ;;  %v188_v11 = vadd.f32 %v187_v9, %v186_v7  ;;  %s445_s13 = sshll.u32 %s528_s9, 4  ;;  %s446_s13 = int_to_ptr.vmem [resolvable:$false] %s445_s13 }
  0x40   : > { %p443_p11 = pnand %p442_p8, %p734_p9  ;;  %s447_s15 = scalar_lea.vmem %s446_s13, 64 }
  0x41   : > { %v183_v14 = vadd.f32 %v182_v10, %v181_v8  ;;  %v189_v15 = vrot.slane %v188_v11, 2  ;;  %p448_p7 = scmp.lt.s32.totalorder %s668_s29, %s446_s13  ;;  %p449_p13 = scmp.lt.s32.totalorder %s447_s15, %s441_s12 }
  0x42   : > { %p444_p0 = pneg %p443_p11 }
  0x43   : > { %v184_v16 = vrot.slane %v183_v14, 1  ;;  %v190_v17 = vadd.f32 %v189_v15, %v188_v11  ;;  %v173_v26 = vld [vmem:[#allocation2] sm:$0x3]  ;;  %p450_p3 = por %p449_p13, %p448_p7 }
  0x45   : > { %v185_v20 = vadd.f32 %v184_v16, %v183_v14  ;;  %v191_v21 = vrot.slane %v190_v17, 1  ;;  %p451_p6 = pnand %p450_p3, %p444_p0 }
  0x47   : > { %v192_v22 = vadd.f32 %v191_v21, %v190_v17 }
  0x49   : > { %v195_v24 = vcombine.low %v185_v20, %v192_v22 }
  0x4b   : > { %v202_v25 = vrot.slane %v195_v24, %v201_v23 }
  0x4d   : > { %v209_v27 = vrot.slane %v202_v25, %v201_v23 }
  0x4f   : > { %v211_v28 = vadd.f32 %v209_v27, %v173_v26 }
  0x51   : > { %216 = vst.msk [vmem:[#allocation2] sm:$0x3] %vm658_vm0, %v211_v28 }
  0x58   : > { %v220_v29 = vld [vmem:[#allocation2] sm:$0x3] }
  0x59   : > { %v221_v30 = vmul.f32 0.25, %v220_v29 }
  0x5b   : > { %222 = vst.msk [vmem:[%s161_s27] sm:$0x3] %vm658_vm0, %v221_v30 }
  0x5c   : > { %454 = shalt.err (!%p451_p6)
}
  0x5d   : > { %s455_s16 = scalar_lea.hbm %s673_s4, 32  ;;  %s459_s23 = scalar_lea.hbm %s723_s1, 64 }
  0x5e   : > { %p456_p4 = scmp.ne.s32.totalorder %s673_s4, %s455_s16  ;;  %p460_p1 = scmp.lt.u32.totalorder %s673_s4, %s723_s1 }
  0x5f   : > { %p461_p2 = scmp.lt.u32.totalorder %s459_s23, %s455_s16  ;;  %p463_p8 = scmp.lt.u32.totalorder %s455_s16, %s673_s4 }
  0x60   : > { %p457_p10 = pnand %p456_p4, %p734_p9 }
  0x61   : > { %p462_p5 = por %p461_p2, %p460_p1 }
  0x62   : > { %p458_p12 = pneg %p457_p10 }
  0x63   : > { %p464_p11 = por %p463_p8, %p462_p5 }
  0x65   : > { %p465_p0 = pnand %p464_p11, %p458_p12 }
  0x67   : > { %468 = shalt.err (!%p465_p0)
}
  0x68   : > { %348 = dma.vmem_to_hbm [thread:$0]  (%p734_p9), %s668_s29, 32, %s673_s4, %s224_s5  }
  0x69 PF: > { %s252_s26 = sand.u32 1, %s503_s6   ;;  %p735_p7 = scmp.ne.s32.totalorder %s728_s21, 0 }
  0x6a   : > { %p736_p13 = scmp.ge.s32.totalorder %s523_s11, 2  ;;  %s253_s28 = scalar_lea.sflag [#allocation5], %s252_s26 }
  0x6c   : > { %p355_p3 = pnand %p736_p13, %p735_p7 }
  0x6e   : > { %498 = dma.done.wait (!%p355_p3), %s253_s28, 32  }
  0x6f   : > { %500 = vsyncadd (!%p355_p3), %s253_s28, 4294967264  ;;  %s17_s11 = sadd.s32 1, %s523_s11   ;;  %s737_s6 = smov %s507_s7 }
  0x70   : > { %p14_p6 = scmp.ge.s32.totalorder %s17_s11, 4   ;;  %s738_s7 = smov %s511_s8 }
  0x71   : > { %s739_s8 = smov %s595_s20  ;;  %s740_s9 = smov %s519_s10 }
  0x72   : > { %s741_s10 = smov %s743_s14  ;;  %16 = sbr.rel (!%p14_p6) target bundleno = 6 (0x6), region = 77 }
  0x79   :  { %258 = vsyncpa [#allocation4], 1 }
  0x7a   :  { %260 = vsyncpa [#allocation4 + $0x1], 1 }
  0x7b   :  { %261 = vsyncpa [#allocation5], 1 }
  0x7c   :  { %263 = vsyncpa [#allocation5 + $0x1], 1 }

</bundles_post_ra>
